<compile_context>
chip_gen: v5e
topology: v5e:2x2
jax: 0.10.0
libtpu: 0.0.40
codegen_flags: <defaults>
</compile_context>

<pallas_src>
import math

import jax
import jax.numpy as jnp
from jax.experimental import pallas as pl
from jax.experimental.pallas import tpu as pltpu


def _upconv_kernel(x_ref, w_ref, b_ref, o_ref):
    # (TM, Cin) @ (Cin, Np) + (1, Np) -> (TM, Np), all on the MXU, f32 accumulate.
    o_ref[...] = (
        jnp.dot(x_ref[...], w_ref[...], preferred_element_type=jnp.float32)
        + b_ref[...]
    ).astype(o_ref.dtype)


def upsample_block(x, weight, bias, *, tile_m=512, lane_pad=True):
    """ConvTranspose3d(filters, filters, kernel_size=2, stride=2) forward.

    x:      (B, C, D, H, W) float32
    weight: (C_in, C_out, 2, 2, 2) float32   (PyTorch ConvTranspose3d layout)
    bias:   (C_out,) float32
    returns (B, C_out, 2D, 2H, 2W)
    """
    B, C, D, H, W = x.shape
    Ci, Co, kd, kh, kw = weight.shape
    assert Ci == C and (kd, kh, kw) == (2, 2, 2)

    M = B * D * H * W          # one row per input voxel, across ALL batches
    N = Co * 8                 # all output channels x 8 kernel taps, fused

    # --- wrapper-side layout plumbing (pure reshapes/transposes) ---
    x2d = jnp.transpose(x, (0, 2, 3, 4, 1)).reshape(M, C)          # channels-last rows
    w2d = weight.reshape(C, N)                                     # (in, out), no .T in kernel
    b2d = jnp.repeat(bias, 8).reshape(1, N)

    # Lane-dense output: pad columns to a multiple of 128 -> unmasked stores.
    Np = N
    if lane_pad and N % 128 != 0:
        Np = ((N + 127) // 128) * 128
        w2d = jnp.pad(w2d, ((0, 0), (0, Np - N)))
        b2d = jnp.pad(b2d, ((0, 0), (0, Np - N)))

    # Row tiling: big blocks to amortize the ~0.35us/step pipeline overhead, but
    # keep >= 2 grid steps when possible so v7x's 2 TensorCores both get work.
    tm = min(tile_m, M)
    while M % tm != 0:
        tm //= 2
    grid = (M // tm,)

    cost = pl.CostEstimate(
        flops=2 * M * C * Np + M * Np,
        transcendentals=0,
        bytes_accessed=4 * (M * C + C * Np + Np + M * Np),
    )

    y2d = pl.pallas_call(
        _upconv_kernel,
        out_shape=jax.ShapeDtypeStruct((M, Np), x.dtype),
        grid_spec=pltpu.PrefetchScalarGridSpec(
            num_scalar_prefetch=0,
            grid=grid,
            in_specs=[
                pl.BlockSpec((tm, C), lambda i: (i, 0)),    # voxel rows
                pl.BlockSpec((C, Np), lambda i: (0, 0)),    # fused weight (in, out)
                pl.BlockSpec((1, Np), lambda i: (0, 0)),    # fused bias
            ],
            out_specs=pl.BlockSpec((tm, Np), lambda i: (i, 0)),
        ),
        compiler_params=pltpu.CompilerParams(
            dimension_semantics=("parallel",)),
        cost_estimate=cost,
    )(x2d, w2d, b2d)

    # Slice off lane padding, then interleave the 2x2x2 taps into the upsampled grid.
    y2d = y2d[:, :N]
    y = y2d.reshape(B, D, H, W, Co, 2, 2, 2)
    y = jnp.transpose(y, (0, 4, 1, 5, 2, 6, 3, 7))        # (B, Co, D, 2, H, 2, W, 2)
    return y.reshape(B, Co, 2 * D, 2 * H, 2 * W)


def _reference(x, weight, bias):
    """Pure-JAX reference of ConvTranspose3d(k=2, s=2), independent code path."""
    B, C, D, H, W = x.shape
    Co = weight.shape[1]
    y = jnp.einsum("bcdhw,copqr->bodphqwr", x, weight,
                   preferred_element_type=jnp.float32)
    y = y.reshape(B, Co, 2 * D, 2 * H, 2 * W)
    return y + bias[None, :, None, None, None]


def init_params(key, filters):
    """Deterministic synthetic init; PyTorch ConvTranspose3d weight layout."""
    kw_, kb_ = jax.random.split(key)
    fan_in = filters * 8
    bound = 1.0 / math.sqrt(fan_in)
    weight = jax.random.uniform(kw_, (filters, filters, 2, 2, 2),
                                jnp.float32, -bound, bound)
    bias = jax.random.uniform(kb_, (filters,), jnp.float32, -bound, bound)
    return weight, bias


if __name__ == "__main__":
    B, C, D, H, W = 2, 4, 8, 8, 8         # batch=2, filters=4, spatial=8^3
    key = jax.random.PRNGKey(0)
    k_x, k_p = jax.random.split(key)

    x = jax.random.normal(k_x, (B, C, D, H, W), jnp.float32)
    weight, bias = init_params(k_p, C)

    out = upsample_block(x, weight, bias)
    out = jax.block_until_ready(out)

    ref = _reference(x, weight, bias)
    assert out.shape == (B, C, 2 * D, 2 * H, 2 * W)
    assert jnp.allclose(out, ref, atol=1e-4, rtol=1e-4), "mismatch vs reference"

    print("KERNEL_OK")
</pallas_src>

<mosaic_0001>
module attributes {stable_mosaic.version = 11 : i64} {
  func.func @_upconv_kernel(%arg0: i32, %arg1: memref<512x4xf32, #tpu.memory_space<vmem>>, %arg2: memref<4x128xf32, #tpu.memory_space<vmem>>, %arg3: memref<1x128xf32, #tpu.memory_space<vmem>>, %arg4: memref<512x128xf32, #tpu.memory_space<vmem>>) attributes {dimension_semantics = [#tpu.dimension_semantics<parallel>], iteration_bounds = array<i64: 2>, scalar_prefetch = 0 : i64, scratch_operands = 0 : i64, tpu.core_type = #tpu.core_type<tc>, window_params = [{transform_indices = @transform_0, window_bounds = array<i64: 512, 4>}, {pipeline_mode = #tpu.pipeline_mode<synchronous>, transform_indices = @transform_1, window_bounds = array<i64: 4, 128>}, {pipeline_mode = #tpu.pipeline_mode<synchronous>, transform_indices = @transform_2, window_bounds = array<i64: 1, 128>}, {transform_indices = @transform_3, window_bounds = array<i64: 512, 128>}]} {
    %c0 = arith.constant 0 : index
    %c0_0 = arith.constant 0 : index
    %0 = vector.load %arg1[%c0, %c0_0] : memref<512x4xf32, #tpu.memory_space<vmem>>, vector<512x4xf32>
    %c0_1 = arith.constant 0 : index
    %c0_2 = arith.constant 0 : index
    %1 = vector.load %arg2[%c0_1, %c0_2] : memref<4x128xf32, #tpu.memory_space<vmem>>, vector<4x128xf32>
    %cst = arith.constant dense<0.000000e+00> : vector<512x128xf32>
    %2 = tpu.matmul %0, %1, %cst {dimension_numbers = #tpu.dot_dimension_numbers<[1], [0], [0], [1], [0, 0, 1, 1], [], []>} : vector<512x4xf32>, vector<4x128xf32>, vector<512x128xf32> -> vector<512x128xf32>
    %c0_3 = arith.constant 0 : index
    %c0_4 = arith.constant 0 : index
    %3 = vector.load %arg3[%c0_3, %c0_4] : memref<1x128xf32, #tpu.memory_space<vmem>>, vector<1x128xf32>
    %4 = vector.broadcast %3 : vector<1x128xf32> to vector<512x128xf32>
    %5 = arith.addf %2, %4 : vector<512x128xf32>
    %c0_5 = arith.constant 0 : index
    %c0_6 = arith.constant 0 : index
    %6 = vector.load %arg4[%c0_5, %c0_6] : memref<512x128xf32, #tpu.memory_space<vmem>>, vector<512x128xf32>
    tpu.vector_store %arg4[%c0_5, %c0_6], %5 {strides = array<i32>} : memref<512x128xf32, #tpu.memory_space<vmem>>, vector<512x128xf32>,
    return
  }
  func.func @transform_0(%arg0: i32) -> (i32, i32) {
    %c0_i32 = arith.constant 0 : i32
    %c0_i32_0 = arith.constant 0 : i32
    return %arg0, %c0_i32 : i32, i32
  }
  func.func @transform_1(%arg0: i32) -> (i32, i32) {
    %c0_i32 = arith.constant 0 : i32
    %c0_i32_0 = arith.constant 0 : i32
    %c0_i32_1 = arith.constant 0 : i32
    return %c0_i32, %c0_i32_0 : i32, i32
  }
  func.func @transform_2(%arg0: i32) -> (i32, i32) {
    %c0_i32 = arith.constant 0 : i32
    %c0_i32_0 = arith.constant 0 : i32
    %c0_i32_1 = arith.constant 0 : i32
    return %c0_i32, %c0_i32_0 : i32, i32
  }
  func.func @transform_3(%arg0: i32) -> (i32, i32) {
    %c0_i32 = arith.constant 0 : i32
    %c0_i32_0 = arith.constant 0 : i32
    return %arg0, %c0_i32 : i32, i32
  }
}

</mosaic_0001>

<bundles_post_ra>
// kernel: tpu_custom_call.1
= control target key start
LH: loop header
LB: loop body
LE: loop exit
PB: predicated region body
PF: predicated region fallthrough
CT: control target
= control target key end

     0   :  { %8 = vsyncpa [#allocation3], 0  ;;  %s1355_s0 = inlined_call_operand.vmem [shape: f32[1024,4], index: 0, kind: input, shape index: {}]   ;;  %s1356_s1 = inlined_call_operand.vmem [shape: f32[4,128], index: 1, kind: input, shape index: {}]   ;;  %s1357_s2 = inlined_call_operand.vmem [shape: f32[1,128], index: 2, kind: input, shape index: {}]   ;;  %s1358_s3 = inlined_call_operand.hbm [shape: f32[1024,128], index: 3, kind: output, shape index: {}]  }
   0x1   :  { %10 = vsyncpa [#allocation3 + $0x1], 0  ;;  %s998_s12 = smov 0   ;;  %s1000_s13 = smov 0  }
   0x2   :  { %s1002_s14 = smov 0   ;;  %s1004_s15 = smov 0  }
   0x3 LB: > { %s1019_s16 = sadd.s32 4294967295, %s974_s15   ;;  %s789_s17 = sadd.s32 4294967294, %s974_s15   ;;  %s974_s15 = sphi %s1004_s15, %s1364_s15   ;;  %s970_s14 = sphi %s1002_s14, %s1363_s14   ;;  %s966_s13 = sphi %s1000_s13, %s1362_s13   ;;  %s962_s12 = sphi %s998_s12, %s1361_s12  }
   0x4   : > { %s1023_s18 = sadd.s32 1, %s974_s15   ;;  %s91_s19 = sadd.s32 1, %s970_s14 }
   0x5   : > { %s88_s20 = ssub.s32 %s974_s15, %s1023_s18  ;;  %p101_p0 = scmp.ne.s32.totalorder %s970_s14, %s966_s13 }
   0x6   : > { %p89_p1 = scmp.eq.s32.totalorder %s88_s20, 0  ;;  %p102_p2 = scmp.eq.s32.totalorder %s1019_s16, 1 }
   0x7   : > { %p107_p3 = scmp.ne.s32.totalorder %s966_s13, %s962_s12  ;;  %p108_p4 = scmp.eq.s32.totalorder %s789_s17, 1 }
   0x8   : > { %s1034_s21 = scalar_select %p89_p1, %s970_s14, %s91_s19  }
   0x9   : > { %p1036_p5 = por %p102_p2, %p101_p0  ;;  %p1040_p6 = por %p108_p4, %p107_p3 }
   0xa   : > { %p792_p7 = scmp.ge.s32.totalorder %s974_s15, 1  ;;  %p141_p8 = scmp.lt.s32.totalorder %s974_s15, 3 }
   0xc   : > { %p142_p9 = pnand %p792_p7, %p141_p8 }
   0xd   : > { %s794_s26 = sshll.u32 (!%p142_p9), %s1019_s16, 6  ;;  %s162_s4 = sand.u32 (!%p142_p9), 1, %s966_s13  }
   0xe   : > { %145 = sbr.rel (%p142_p9) target bundleno = 282 (0x11a), region = 32  ;;  %p166_p10 = scmp.lt.s32.totalorder (!%p142_p9), %s794_s26, 127 }
   0xf   : > { %s793_s5 = sshll.u32 (!%p142_p9), %s162_s4, 9  ;;  %s866_s9 = sshll.u32 (!%p142_p9), %s1019_s16, 9 }
  0x10   : > { %s1193_s8 = scalar_lea.vmem (!%p142_p9), [#allocation2], %s793_s5  ;;  %s723_s17 = scalar_lea.hbm (!%p142_p9), %s1358_s3, %s866_s9 }
  0x11   : > { %s724_s16 = sshll.u32 (!%p142_p9), %s1193_s8, 4  ;;  %s726_s19 = sshll.u32 (!%p142_p9), %s723_s17, 4  ;;  %s725_s16 = int_to_ptr.vmem [resolvable:$true] %s724_s16  ;;  %s727_s19 = int_to_ptr.hbm [resolvable:$true] %s726_s19 }
  0x12   : > { %s712_s20 = scalar_lea.sflag (!%p142_p9), [#allocation3], %s162_s4  ;;  %s926_s24 = sshra.s32 (!%p142_p9), %s727_s19, 4  ;;  %s927_s24 = int_to_ptr.hbm [resolvable:$true] %s926_s24 }
  0x13   : > { %v236_v0 = vld [vmem:[%s1356_s1] sm:$0xf]  ;;  %vm434_vm0 = vcmask 1043456   ;;  %s1366_s26 = smov (!%p166_p10, %s794_s26), 127  ;;  %vm241_vm1 = vcmask 31744   ;;  %s928_s25 = scalar_lea.hbm %s927_s24, 512 }
  0x14   : > { %868 = vmatpush.msk.msra.mxu2 %vm434_vm0, %v236_v0  ;;  %869 = vmatpush.msk.msra.mxu3 %vm434_vm0, %v236_v0  ;;  %s795_s27 = sshll.u32 %s1366_s26, 3  ;;  %p929_p11 = scmp.ne.s32.totalorder %s927_s24, %s928_s25 }
  0x15   : > { %796 = vmatpush.msk.msra.mxu0 %vm434_vm0, %v236_v0  ;;  %867 = vmatpush.msk.msra.mxu1 %vm434_vm0, %v236_v0  ;;  %s1053_s30 = scalar_lea.vmem %s1355_s0, %s795_s27  ;;  %s932_s28 = scalar_lea.hbm %s1358_s3, 1024 }
  0x16   : > { %v204_v1 = vld [vmem:[%s1053_s30 + $0x100] sm:$0xff]  ;;  %v205_v5 = vld [vmem:[%s1053_s30 + $0x108] sm:$0xff]  ;;  %v206_v9 = vld [vmem:[%s1053_s30 + $0x110] sm:$0xff]  ;;  %p930_p12 = pnand %p929_p11, %p1036_p5  ;;  %p933_p0 = scmp.lt.s32.totalorder %s927_s24, %s1358_s3 }
  0x17   : > { %v220_v2 = vld [vmem:[%s1053_s30 + $0x180] sm:$0xff]  ;;  %829 = vmatmul.msk.f32.vlgmr.msra.gmra.mxu2 %vm241_vm1, %v204_v1  ;;  %v221_v6 = vld [vmem:[%s1053_s30 + $0x188] sm:$0xff]  ;;  %v222_v10 = vld [vmem:[%s1053_s30 + $0x190] sm:$0xff]  ;;  %p934_p1 = scmp.lt.s32.totalorder %s932_s28, %s928_s25 }
  0x18   : > { %v172_v3 = vld [vmem:[%s1053_s30] sm:$0xff]  ;;  %845 = vmatmul.msk.f32.vlgmr.msra.gmra.mxu3 %vm241_vm1, %v220_v2  ;;  %v173_v7 = vld [vmem:[%s1053_s30 + $0x8] sm:$0xff]  ;;  %v174_v11 = vld [vmem:[%s1053_s30 + $0x10] sm:$0xff]  ;;  %p931_p13 = pneg %p930_p12 }
  0x19   : > { %v188_v4 = vld [vmem:[%s1053_s30 + $0x80] sm:$0xff]  ;;  %797 = vmatmul.msk.f32.vlgmr.msra.gmra.mxu0 %vm241_vm1, %v172_v3  ;;  %v189_v8 = vld [vmem:[%s1053_s30 + $0x88] sm:$0xff]  ;;  %v190_v12 = vld [vmem:[%s1053_s30 + $0x90] sm:$0xff]  ;;  %p935_p2 = por %p934_p1, %p933_p0 }
  0x1a   : > { %813 = vmatmul.msk.f32.vlgmr.msra.gmra.mxu1 %vm241_vm1, %v188_v4  ;;  %v207_v13 = vld [vmem:[%s1053_s30 + $0x118] sm:$0xff]  ;;  %v208_v17 = vld [vmem:[%s1053_s30 + $0x120] sm:$0xff]  ;;  %v209_v21 = vld [vmem:[%s1053_s30 + $0x128] sm:$0xff] }
  0x1b   : > { %v223_v14 = vld [vmem:[%s1053_s30 + $0x198] sm:$0xff]  ;;  %v224_v18 = vld [vmem:[%s1053_s30 + $0x1a0] sm:$0xff]  ;;  %v225_v22 = vld [vmem:[%s1053_s30 + $0x1a8] sm:$0xff]  ;;  %p936_p3 = pnand %p935_p2, %p931_p13 }
  0x1c   : > { %v175_v15 = vld [vmem:[%s1053_s30 + $0x18] sm:$0xff]  ;;  %v176_v19 = vld [vmem:[%s1053_s30 + $0x20] sm:$0xff]  ;;  %v177_v23 = vld [vmem:[%s1053_s30 + $0x28] sm:$0xff] }
  0x1d   : > { %v191_v16 = vld [vmem:[%s1053_s30 + $0x98] sm:$0xff]  ;;  %v192_v20 = vld [vmem:[%s1053_s30 + $0xa0] sm:$0xff]  ;;  %v193_v24 = vld [vmem:[%s1053_s30 + $0xa8] sm:$0xff] }
  0x1e   : > { %v210_v25 = vld [vmem:[%s1053_s30 + $0x130] sm:$0xff]  ;;  %v211_v29 = vld [vmem:[%s1053_s30 + $0x138] sm:$0xff]  ;;  %v212_v33 = vld [vmem:[%s1053_s30 + $0x140] sm:$0xff] }
  0x1f   : > { %830 = vmatmul.msk.f32.gmra.mxu2 %vm241_vm1, %v205_v5  ;;  %v226_v26 = vld [vmem:[%s1053_s30 + $0x1b0] sm:$0xff]  ;;  %v227_v30 = vld [vmem:[%s1053_s30 + $0x1b8] sm:$0xff]  ;;  %v228_v34 = vld [vmem:[%s1053_s30 + $0x1c0] sm:$0xff] }
  0x20   : > { %846 = vmatmul.msk.f32.gmra.mxu3 %vm241_vm1, %v221_v6  ;;  %v178_v27 = vld [vmem:[%s1053_s30 + $0x30] sm:$0xff]  ;;  %v179_v31 = vld [vmem:[%s1053_s30 + $0x38] sm:$0xff]  ;;  %v180_v35 = vld [vmem:[%s1053_s30 + $0x40] sm:$0xff] }
  0x21   : > { %798 = vmatmul.msk.f32.gmra.mxu0 %vm241_vm1, %v173_v7  ;;  %v194_v28 = vld [vmem:[%s1053_s30 + $0xb0] sm:$0xff]  ;;  %v195_v32 = vld [vmem:[%s1053_s30 + $0xb8] sm:$0xff]  ;;  %v196_v36 = vld [vmem:[%s1053_s30 + $0xc0] sm:$0xff] }
  0x22   : > { %814 = vmatmul.msk.f32.gmra.mxu1 %vm241_vm1, %v189_v8  ;;  %v213_v37 = vld [vmem:[%s1053_s30 + $0x148] sm:$0xff]  ;;  %v214_v41 = vld [vmem:[%s1053_s30 + $0x150] sm:$0xff]  ;;  %v215_v45 = vld [vmem:[%s1053_s30 + $0x158] sm:$0xff] }
  0x23   : > { %v229_v38 = vld [vmem:[%s1053_s30 + $0x1c8] sm:$0xff]  ;;  %v230_v42 = vld [vmem:[%s1053_s30 + $0x1d0] sm:$0xff]  ;;  %v231_v46 = vld [vmem:[%s1053_s30 + $0x1d8] sm:$0xff] }
  0x24   : > { %v181_v39 = vld [vmem:[%s1053_s30 + $0x48] sm:$0xff]  ;;  %v182_v43 = vld [vmem:[%s1053_s30 + $0x50] sm:$0xff]  ;;  %v183_v47 = vld [vmem:[%s1053_s30 + $0x58] sm:$0xff] }
  0x25   : > { %v197_v40 = vld [vmem:[%s1053_s30 + $0xc8] sm:$0xff]  ;;  %v198_v44 = vld [vmem:[%s1053_s30 + $0xd0] sm:$0xff]  ;;  %v199_v48 = vld [vmem:[%s1053_s30 + $0xd8] sm:$0xff] }
  0x26   : > { %v216_v49 = vld [vmem:[%s1053_s30 + $0x160] sm:$0xff]  ;;  %v217_v53 = vld [vmem:[%s1053_s30 + $0x168] sm:$0xff]  ;;  %v218_v57 = vld [vmem:[%s1053_s30 + $0x170] sm:$0xff] }
  0x27   : > { %831 = vmatmul.msk.f32.gmra.mxu2 %vm241_vm1, %v206_v9  ;;  %v232_v50 = vld [vmem:[%s1053_s30 + $0x1e0] sm:$0xff]  ;;  %v233_v54 = vld [vmem:[%s1053_s30 + $0x1e8] sm:$0xff]  ;;  %v234_v58 = vld [vmem:[%s1053_s30 + $0x1f0] sm:$0xff] }
  0x28   : > { %847 = vmatmul.msk.f32.gmra.mxu3 %vm241_vm1, %v222_v10  ;;  %v184_v51 = vld [vmem:[%s1053_s30 + $0x60] sm:$0xff]  ;;  %v185_v55 = vld [vmem:[%s1053_s30 + $0x68] sm:$0xff]  ;;  %v186_v59 = vld [vmem:[%s1053_s30 + $0x70] sm:$0xff] }
  0x29   : > { %799 = vmatmul.msk.f32.gmra.mxu0 %vm241_vm1, %v174_v11  ;;  %v200_v52 = vld [vmem:[%s1053_s30 + $0xe0] sm:$0xff]  ;;  %v201_v56 = vld [vmem:[%s1053_s30 + $0xe8] sm:$0xff]  ;;  %v202_v60 = vld [vmem:[%s1053_s30 + $0xf0] sm:$0xff] }
  0x2a   : > { %815 = vmatmul.msk.f32.gmra.mxu1 %vm241_vm1, %v190_v12  ;;  %v219_v61 = vld [vmem:[%s1053_s30 + $0x178] sm:$0xff]  ;;  %v1189_v1 = vld [vmem:[%s1357_s2] ss:$0 sm:$0xff] }
  0x2b   : > { %v235_v62 = vld [vmem:[%s1053_s30 + $0x1f8] sm:$0xff] }
  0x2c   : > { %v187_v63 = vld [vmem:[%s1053_s30 + $0x78] sm:$0xff] }
  0x2d   : > { %v203_v0 = vld [vmem:[%s1053_s30 + $0xf8] sm:$0xff] }
  0x2f   : > { %832 = vmatmul.msk.f32.gmra.mxu2 %vm241_vm1, %v207_v13 }
  0x30   : > { %848 = vmatmul.msk.f32.gmra.mxu3 %vm241_vm1, %v223_v14 }
  0x31   : > { %800 = vmatmul.msk.f32.gmra.mxu0 %vm241_vm1, %v175_v15 }
  0x32   : > { %816 = vmatmul.msk.f32.gmra.mxu1 %vm241_vm1, %v191_v16 }
  0x37   : > { %833 = vmatmul.msk.f32.gmra.mxu2 %vm241_vm1, %v208_v17 }
  0x38   : > { %849 = vmatmul.msk.f32.gmra.mxu3 %vm241_vm1, %v224_v18 }
  0x39   : > { %801 = vmatmul.msk.f32.gmra.mxu0 %vm241_vm1, %v176_v19 }
  0x3a   : > { %817 = vmatmul.msk.f32.gmra.mxu1 %vm241_vm1, %v192_v20 }
  0x3f   : > { %834 = vmatmul.msk.f32.gmra.mxu2 %vm241_vm1, %v209_v21 }
  0x40   : > { %850 = vmatmul.msk.f32.gmra.mxu3 %vm241_vm1, %v225_v22 }
  0x41   : > { %802 = vmatmul.msk.f32.gmra.mxu0 %vm241_vm1, %v177_v23 }
  0x42   : > { %818 = vmatmul.msk.f32.gmra.mxu1 %vm241_vm1, %v193_v24 }
  0x47   : > { %835 = vmatmul.msk.f32.gmra.mxu2 %vm241_vm1, %v210_v25 }
  0x48   : > { %851 = vmatmul.msk.f32.gmra.mxu3 %vm241_vm1, %v226_v26 }
  0x49   : > { %803 = vmatmul.msk.f32.gmra.mxu0 %vm241_vm1, %v178_v27 }
  0x4a   : > { %819 = vmatmul.msk.f32.gmra.mxu1 %vm241_vm1, %v194_v28 }
  0x4f   : > { %836 = vmatmul.msk.f32.gmra.mxu2 %vm241_vm1, %v211_v29 }
  0x50   : > { %852 = vmatmul.msk.f32.gmra.mxu3 %vm241_vm1, %v227_v30 }
  0x51   : > { %804 = vmatmul.msk.f32.gmra.mxu0 %vm241_vm1, %v179_v31 }
  0x52   : > { %820 = vmatmul.msk.f32.gmra.mxu1 %vm241_vm1, %v195_v32 }
  0x57   : > { %837 = vmatmul.msk.f32.gmra.mxu2 %vm241_vm1, %v212_v33 }
  0x58   : > { %853 = vmatmul.msk.f32.gmra.mxu3 %vm241_vm1, %v228_v34 }
  0x59   : > { %805 = vmatmul.msk.f32.gmra.mxu0 %vm241_vm1, %v180_v35 }
  0x5a   : > { %821 = vmatmul.msk.f32.gmra.mxu1 %vm241_vm1, %v196_v36 }
  0x5f   : > { %838 = vmatmul.msk.f32.gmra.mxu2 %vm241_vm1, %v213_v37 }
  0x60   : > { %854 = vmatmul.msk.f32.gmra.mxu3 %vm241_vm1, %v229_v38 }
  0x61   : > { %806 = vmatmul.msk.f32.gmra.mxu0 %vm241_vm1, %v181_v39 }
  0x62   : > { %822 = vmatmul.msk.f32.gmra.mxu1 %vm241_vm1, %v197_v40 }
  0x67   : > { %839 = vmatmul.msk.f32.gmra.mxu2 %vm241_vm1, %v214_v41 }
  0x68   : > { %855 = vmatmul.msk.f32.gmra.mxu3 %vm241_vm1, %v230_v42 }
  0x69   : > { %807 = vmatmul.msk.f32.gmra.mxu0 %vm241_vm1, %v182_v43 }
  0x6a   : > { %823 = vmatmul.msk.f32.gmra.mxu1 %vm241_vm1, %v198_v44 }
  0x6f   : > { %840 = vmatmul.msk.f32.gmra.mxu2 %vm241_vm1, %v215_v45 }
  0x70   : > { %856 = vmatmul.msk.f32.gmra.mxu3 %vm241_vm1, %v231_v46 }
  0x71   : > { %808 = vmatmul.msk.f32.gmra.mxu0 %vm241_vm1, %v183_v47 }
  0x72   : > { %824 = vmatmul.msk.f32.gmra.mxu1 %vm241_vm1, %v199_v48 }
  0x77   : > { %841 = vmatmul.msk.f32.gmra.mxu2 %vm241_vm1, %v216_v49 }
  0x78   : > { %857 = vmatmul.msk.f32.gmra.mxu3 %vm241_vm1, %v232_v50 }
  0x79   : > { %809 = vmatmul.msk.f32.gmra.mxu0 %vm241_vm1, %v184_v51 }
  0x7a   : > { %825 = vmatmul.msk.f32.gmra.mxu1 %vm241_vm1, %v200_v52 }
  0x7f   : > { %842 = vmatmul.msk.f32.gmra.mxu2 %vm241_vm1, %v217_v53 }
  0x80   : > { %858 = vmatmul.msk.f32.gmra.mxu3 %vm241_vm1, %v233_v54 }
  0x81   : > { %810 = vmatmul.msk.f32.gmra.mxu0 %vm241_vm1, %v185_v55 }
  0x82   : > { %826 = vmatmul.msk.f32.gmra.mxu1 %vm241_vm1, %v201_v56 }
  0x87   : > { %843 = vmatmul.msk.f32.gmra.mxu2 %vm241_vm1, %v218_v57 }
  0x88   : > { %859 = vmatmul.msk.f32.gmra.mxu3 %vm241_vm1, %v234_v58 }
  0x89   : > { %811 = vmatmul.msk.f32.gmra.mxu0 %vm241_vm1, %v186_v59 }
  0x8a   : > { %827 = vmatmul.msk.f32.gmra.mxu1 %vm241_vm1, %v202_v60 }
  0x8f   : > { %844 = vmatmul.msk.f32.gmra.mxu2 %vm241_vm1, %v219_v61 }
  0x90   : > { %860 = vmatmul.msk.f32.gmra.mxu3 %vm241_vm1, %v235_v62 }
  0x91   : > { %812 = vmatmul.msk.f32.gmra.mxu0 %vm241_vm1, %v187_v63 }
  0x92   : > { %828 = vmatmul.msk.f32.gmra.mxu1 %vm241_vm1, %v203_v0 }
  0x96   : > { %v455_v2 = vpop.f32.mrf.mxu0 }
  0x97   : > { %v503_v3 = vpop.f32.mrf.mxu1  ;;  %v456_v4 = vadd.f32 %v1189_v1, %v455_v2 }
  0x98   : > { %v504_v5 = vadd.f32 %v1189_v1, %v503_v3 }
  0x99   : > { %647 = vst [vmem:[%s1193_s8] sm:$0xff] %v456_v4 }
  0x9a   : > { %663 = vst [vmem:[%s1193_s8 + $0x80] sm:$0xff] %v504_v5  ;;  %v551_v6 = vpop.f32.mrf.mxu2 }
  0x9b   : > { %v599_v7 = vpop.f32.mrf.mxu3  ;;  %v552_v8 = vadd.f32 %v1189_v1, %v551_v6 }
  0x9c   : > { %v600_v9 = vadd.f32 %v1189_v1, %v599_v7 }
  0x9d   : > { %679 = vst [vmem:[%s1193_s8 + $0x100] sm:$0xff] %v552_v8 }
  0x9e   : > { %v458_v10 = vpop.f32.mrf.mxu0  ;;  %695 = vst [vmem:[%s1193_s8 + $0x180] sm:$0xff] %v600_v9 }
  0x9f   : > { %v506_v11 = vpop.f32.mrf.mxu1  ;;  %v459_v12 = vadd.f32 %v1189_v1, %v458_v10 }
  0xa0   : > { %v507_v13 = vadd.f32 %v1189_v1, %v506_v11 }
  0xa1   : > { %648 = vst [vmem:[%s1193_s8 + $0x8] sm:$0xff] %v459_v12 }
  0xa2   : > { %664 = vst [vmem:[%s1193_s8 + $0x88] sm:$0xff] %v507_v13  ;;  %v554_v14 = vpop.f32.mrf.mxu2 }
  0xa3   : > { %v602_v15 = vpop.f32.mrf.mxu3  ;;  %v555_v16 = vadd.f32 %v1189_v1, %v554_v14 }
  0xa4   : > { %v603_v17 = vadd.f32 %v1189_v1, %v602_v15 }
  0xa5   : > { %680 = vst [vmem:[%s1193_s8 + $0x108] sm:$0xff] %v555_v16 }
  0xa6   : > { %v461_v18 = vpop.f32.mrf.mxu0  ;;  %696 = vst [vmem:[%s1193_s8 + $0x188] sm:$0xff] %v603_v17 }
  0xa7   : > { %v509_v19 = vpop.f32.mrf.mxu1  ;;  %v462_v20 = vadd.f32 %v1189_v1, %v461_v18 }
  0xa8   : > { %v510_v21 = vadd.f32 %v1189_v1, %v509_v19 }
  0xa9   : > { %649 = vst [vmem:[%s1193_s8 + $0x10] sm:$0xff] %v462_v20 }
  0xaa   : > { %665 = vst [vmem:[%s1193_s8 + $0x90] sm:$0xff] %v510_v21  ;;  %v557_v22 = vpop.f32.mrf.mxu2 }
  0xab   : > { %v605_v23 = vpop.f32.mrf.mxu3  ;;  %v558_v24 = vadd.f32 %v1189_v1, %v557_v22 }
  0xac   : > { %v606_v25 = vadd.f32 %v1189_v1, %v605_v23 }
  0xad   : > { %681 = vst [vmem:[%s1193_s8 + $0x110] sm:$0xff] %v558_v24 }
  0xae   : > { %v464_v26 = vpop.f32.mrf.mxu0  ;;  %697 = vst [vmem:[%s1193_s8 + $0x190] sm:$0xff] %v606_v25 }
  0xaf   : > { %v512_v27 = vpop.f32.mrf.mxu1  ;;  %v465_v28 = vadd.f32 %v1189_v1, %v464_v26 }
  0xb0   : > { %v513_v29 = vadd.f32 %v1189_v1, %v512_v27 }
  0xb1   : > { %650 = vst [vmem:[%s1193_s8 + $0x18] sm:$0xff] %v465_v28 }
  0xb2   : > { %666 = vst [vmem:[%s1193_s8 + $0x98] sm:$0xff] %v513_v29  ;;  %v560_v30 = vpop.f32.mrf.mxu2 }
  0xb3   : > { %v608_v31 = vpop.f32.mrf.mxu3  ;;  %v561_v32 = vadd.f32 %v1189_v1, %v560_v30 }
  0xb4   : > { %v609_v33 = vadd.f32 %v1189_v1, %v608_v31 }
  0xb5   : > { %682 = vst [vmem:[%s1193_s8 + $0x118] sm:$0xff] %v561_v32 }
  0xb6   : > { %v467_v34 = vpop.f32.mrf.mxu0  ;;  %698 = vst [vmem:[%s1193_s8 + $0x198] sm:$0xff] %v609_v33 }
  0xb7   : > { %v515_v35 = vpop.f32.mrf.mxu1  ;;  %v468_v36 = vadd.f32 %v1189_v1, %v467_v34 }
  0xb8   : > { %v516_v37 = vadd.f32 %v1189_v1, %v515_v35 }
  0xb9   : > { %651 = vst [vmem:[%s1193_s8 + $0x20] sm:$0xff] %v468_v36 }
  0xba   : > { %667 = vst [vmem:[%s1193_s8 + $0xa0] sm:$0xff] %v516_v37  ;;  %v563_v38 = vpop.f32.mrf.mxu2 }
  0xbb   : > { %v611_v39 = vpop.f32.mrf.mxu3  ;;  %v564_v40 = vadd.f32 %v1189_v1, %v563_v38 }
  0xbc   : > { %v612_v41 = vadd.f32 %v1189_v1, %v611_v39 }
  0xbd   : > { %683 = vst [vmem:[%s1193_s8 + $0x120] sm:$0xff] %v564_v40 }
  0xbe   : > { %v470_v42 = vpop.f32.mrf.mxu0  ;;  %699 = vst [vmem:[%s1193_s8 + $0x1a0] sm:$0xff] %v612_v41 }
  0xbf   : > { %v518_v43 = vpop.f32.mrf.mxu1  ;;  %v471_v44 = vadd.f32 %v1189_v1, %v470_v42 }
  0xc0   : > { %v519_v45 = vadd.f32 %v1189_v1, %v518_v43 }
  0xc1   : > { %652 = vst [vmem:[%s1193_s8 + $0x28] sm:$0xff] %v471_v44 }
  0xc2   : > { %668 = vst [vmem:[%s1193_s8 + $0xa8] sm:$0xff] %v519_v45  ;;  %v566_v46 = vpop.f32.mrf.mxu2 }
  0xc3   : > { %v614_v47 = vpop.f32.mrf.mxu3  ;;  %v567_v48 = vadd.f32 %v1189_v1, %v566_v46 }
  0xc4   : > { %v615_v49 = vadd.f32 %v1189_v1, %v614_v47 }
  0xc5   : > { %684 = vst [vmem:[%s1193_s8 + $0x128] sm:$0xff] %v567_v48 }
  0xc6   : > { %v473_v50 = vpop.f32.mrf.mxu0  ;;  %700 = vst [vmem:[%s1193_s8 + $0x1a8] sm:$0xff] %v615_v49 }
  0xc7   : > { %v521_v51 = vpop.f32.mrf.mxu1  ;;  %v474_v52 = vadd.f32 %v1189_v1, %v473_v50 }
  0xc8   : > { %v522_v53 = vadd.f32 %v1189_v1, %v521_v51 }
  0xc9   : > { %653 = vst [vmem:[%s1193_s8 + $0x30] sm:$0xff] %v474_v52 }
  0xca   : > { %669 = vst [vmem:[%s1193_s8 + $0xb0] sm:$0xff] %v522_v53  ;;  %v569_v54 = vpop.f32.mrf.mxu2 }
  0xcb   : > { %v617_v55 = vpop.f32.mrf.mxu3  ;;  %v570_v56 = vadd.f32 %v1189_v1, %v569_v54 }
  0xcc   : > { %v618_v57 = vadd.f32 %v1189_v1, %v617_v55 }
  0xcd   : > { %685 = vst [vmem:[%s1193_s8 + $0x130] sm:$0xff] %v570_v56 }
  0xce   : > { %v476_v58 = vpop.f32.mrf.mxu0  ;;  %701 = vst [vmem:[%s1193_s8 + $0x1b0] sm:$0xff] %v618_v57 }
  0xcf   : > { %v524_v59 = vpop.f32.mrf.mxu1  ;;  %v477_v60 = vadd.f32 %v1189_v1, %v476_v58 }
  0xd0   : > { %v525_v61 = vadd.f32 %v1189_v1, %v524_v59 }
  0xd1   : > { %654 = vst [vmem:[%s1193_s8 + $0x38] sm:$0xff] %v477_v60 }
  0xd2   : > { %670 = vst [vmem:[%s1193_s8 + $0xb8] sm:$0xff] %v525_v61  ;;  %v572_v62 = vpop.f32.mrf.mxu2 }
  0xd3   : > { %v620_v63 = vpop.f32.mrf.mxu3  ;;  %v573_v0 = vadd.f32 %v1189_v1, %v572_v62 }
  0xd4   : > { %v621_v2 = vadd.f32 %v1189_v1, %v620_v63 }
  0xd5   : > { %686 = vst [vmem:[%s1193_s8 + $0x138] sm:$0xff] %v573_v0 }
  0xd6   : > { %v479_v3 = vpop.f32.mrf.mxu0  ;;  %702 = vst [vmem:[%s1193_s8 + $0x1b8] sm:$0xff] %v621_v2 }
  0xd7   : > { %v527_v4 = vpop.f32.mrf.mxu1  ;;  %v480_v5 = vadd.f32 %v1189_v1, %v479_v3 }
  0xd8   : > { %v528_v6 = vadd.f32 %v1189_v1, %v527_v4 }
  0xd9   : > { %655 = vst [vmem:[%s1193_s8 + $0x40] sm:$0xff] %v480_v5 }
  0xda   : > { %671 = vst [vmem:[%s1193_s8 + $0xc0] sm:$0xff] %v528_v6  ;;  %v575_v7 = vpop.f32.mrf.mxu2 }
  0xdb   : > { %v623_v8 = vpop.f32.mrf.mxu3  ;;  %v576_v9 = vadd.f32 %v1189_v1, %v575_v7 }
  0xdc   : > { %v624_v10 = vadd.f32 %v1189_v1, %v623_v8 }
  0xdd   : > { %687 = vst [vmem:[%s1193_s8 + $0x140] sm:$0xff] %v576_v9 }
  0xde   : > { %v482_v11 = vpop.f32.mrf.mxu0  ;;  %703 = vst [vmem:[%s1193_s8 + $0x1c0] sm:$0xff] %v624_v10 }
  0xdf   : > { %v530_v12 = vpop.f32.mrf.mxu1  ;;  %v483_v13 = vadd.f32 %v1189_v1, %v482_v11 }
  0xe0   : > { %v531_v14 = vadd.f32 %v1189_v1, %v530_v12 }
  0xe1   : > { %656 = vst [vmem:[%s1193_s8 + $0x48] sm:$0xff] %v483_v13 }
  0xe2   : > { %672 = vst [vmem:[%s1193_s8 + $0xc8] sm:$0xff] %v531_v14  ;;  %v578_v15 = vpop.f32.mrf.mxu2 }
  0xe3   : > { %v626_v16 = vpop.f32.mrf.mxu3  ;;  %v579_v17 = vadd.f32 %v1189_v1, %v578_v15 }
  0xe4   : > { %v627_v18 = vadd.f32 %v1189_v1, %v626_v16 }
  0xe5   : > { %688 = vst [vmem:[%s1193_s8 + $0x148] sm:$0xff] %v579_v17 }
  0xe6   : > { %v485_v19 = vpop.f32.mrf.mxu0  ;;  %704 = vst [vmem:[%s1193_s8 + $0x1c8] sm:$0xff] %v627_v18 }
  0xe7   : > { %v533_v20 = vpop.f32.mrf.mxu1  ;;  %v486_v21 = vadd.f32 %v1189_v1, %v485_v19 }
  0xe8   : > { %v534_v22 = vadd.f32 %v1189_v1, %v533_v20 }
  0xe9   : > { %657 = vst [vmem:[%s1193_s8 + $0x50] sm:$0xff] %v486_v21 }
  0xea   : > { %673 = vst [vmem:[%s1193_s8 + $0xd0] sm:$0xff] %v534_v22  ;;  %v581_v23 = vpop.f32.mrf.mxu2 }
  0xeb   : > { %v629_v24 = vpop.f32.mrf.mxu3  ;;  %v582_v25 = vadd.f32 %v1189_v1, %v581_v23 }
  0xec   : > { %v630_v26 = vadd.f32 %v1189_v1, %v629_v24 }
  0xed   : > { %689 = vst [vmem:[%s1193_s8 + $0x150] sm:$0xff] %v582_v25 }
  0xee   : > { %v488_v27 = vpop.f32.mrf.mxu0  ;;  %705 = vst [vmem:[%s1193_s8 + $0x1d0] sm:$0xff] %v630_v26 }
  0xef   : > { %v536_v28 = vpop.f32.mrf.mxu1  ;;  %v489_v29 = vadd.f32 %v1189_v1, %v488_v27 }
  0xf0   : > { %v537_v30 = vadd.f32 %v1189_v1, %v536_v28 }
  0xf1   : > { %658 = vst [vmem:[%s1193_s8 + $0x58] sm:$0xff] %v489_v29 }
  0xf2   : > { %674 = vst [vmem:[%s1193_s8 + $0xd8] sm:$0xff] %v537_v30  ;;  %v584_v31 = vpop.f32.mrf.mxu2 }
  0xf3   : > { %v632_v32 = vpop.f32.mrf.mxu3  ;;  %v585_v33 = vadd.f32 %v1189_v1, %v584_v31 }
  0xf4   : > { %v633_v34 = vadd.f32 %v1189_v1, %v632_v32 }
  0xf5   : > { %690 = vst [vmem:[%s1193_s8 + $0x158] sm:$0xff] %v585_v33 }
  0xf6   : > { %v491_v35 = vpop.f32.mrf.mxu0  ;;  %706 = vst [vmem:[%s1193_s8 + $0x1d8] sm:$0xff] %v633_v34 }
  0xf7   : > { %v539_v36 = vpop.f32.mrf.mxu1  ;;  %v492_v37 = vadd.f32 %v1189_v1, %v491_v35 }
  0xf8   : > { %v540_v38 = vadd.f32 %v1189_v1, %v539_v36 }
  0xf9   : > { %659 = vst [vmem:[%s1193_s8 + $0x60] sm:$0xff] %v492_v37 }
  0xfa   : > { %675 = vst [vmem:[%s1193_s8 + $0xe0] sm:$0xff] %v540_v38  ;;  %v587_v39 = vpop.f32.mrf.mxu2 }
  0xfb   : > { %v635_v40 = vpop.f32.mrf.mxu3  ;;  %v588_v41 = vadd.f32 %v1189_v1, %v587_v39 }
  0xfc   : > { %v636_v42 = vadd.f32 %v1189_v1, %v635_v40 }
  0xfd   : > { %691 = vst [vmem:[%s1193_s8 + $0x160] sm:$0xff] %v588_v41 }
  0xfe   : > { %v494_v43 = vpop.f32.mrf.mxu0  ;;  %707 = vst [vmem:[%s1193_s8 + $0x1e0] sm:$0xff] %v636_v42 }
  0xff   : > { %v542_v44 = vpop.f32.mrf.mxu1  ;;  %v495_v45 = vadd.f32 %v1189_v1, %v494_v43 }
 0x100   : > { %v543_v46 = vadd.f32 %v1189_v1, %v542_v44 }
 0x101   : > { %660 = vst [vmem:[%s1193_s8 + $0x68] sm:$0xff] %v495_v45 }
 0x102   : > { %676 = vst [vmem:[%s1193_s8 + $0xe8] sm:$0xff] %v543_v46  ;;  %v590_v47 = vpop.f32.mrf.mxu2 }
 0x103   : > { %v638_v48 = vpop.f32.mrf.mxu3  ;;  %v591_v49 = vadd.f32 %v1189_v1, %v590_v47 }
 0x104   : > { %v639_v50 = vadd.f32 %v1189_v1, %v638_v48 }
 0x105   : > { %692 = vst [vmem:[%s1193_s8 + $0x168] sm:$0xff] %v591_v49 }
 0x106   : > { %v497_v51 = vpop.f32.mrf.mxu0  ;;  %708 = vst [vmem:[%s1193_s8 + $0x1e8] sm:$0xff] %v639_v50 }
 0x107   : > { %v545_v52 = vpop.f32.mrf.mxu1  ;;  %v498_v53 = vadd.f32 %v1189_v1, %v497_v51 }
 0x108   : > { %v546_v54 = vadd.f32 %v1189_v1, %v545_v52 }
 0x109   : > { %661 = vst [vmem:[%s1193_s8 + $0x70] sm:$0xff] %v498_v53 }
 0x10a   : > { %677 = vst [vmem:[%s1193_s8 + $0xf0] sm:$0xff] %v546_v54  ;;  %v593_v55 = vpop.f32.mrf.mxu2 }
 0x10b   : > { %v641_v56 = vpop.f32.mrf.mxu3  ;;  %v594_v57 = vadd.f32 %v1189_v1, %v593_v55 }
 0x10c   : > { %v642_v58 = vadd.f32 %v1189_v1, %v641_v56 }
 0x10d   : > { %693 = vst [vmem:[%s1193_s8 + $0x170] sm:$0xff] %v594_v57 }
 0x10e   : > { %v500_v59 = vpop.f32.mrf.mxu0  ;;  %709 = vst [vmem:[%s1193_s8 + $0x1f0] sm:$0xff] %v642_v58 }
 0x10f   : > { %v548_v60 = vpop.f32.mrf.mxu1  ;;  %v501_v61 = vadd.f32 %v1189_v1, %v500_v59 }
 0x110   : > { %v549_v62 = vadd.f32 %v1189_v1, %v548_v60 }
 0x111   : > { %662 = vst [vmem:[%s1193_s8 + $0x78] sm:$0xff] %v501_v61 }
 0x112   : > { %678 = vst [vmem:[%s1193_s8 + $0xf8] sm:$0xff] %v549_v62  ;;  %v596_v63 = vpop.f32.mrf.mxu2 }
 0x113   : > { %v644_v0 = vpop.f32.mrf.mxu3  ;;  %v597_v2 = vadd.f32 %v1189_v1, %v596_v63 }
 0x114   : > { %v645_v3 = vadd.f32 %v1189_v1, %v644_v0 }
 0x115   : > { %694 = vst [vmem:[%s1193_s8 + $0x178] sm:$0xff] %v597_v2 }
 0x116   : > { %710 = vst [vmem:[%s1193_s8 + $0x1f8] sm:$0xff] %v645_v3 }
 0x117   : > { %939 = shalt.err (!%p936_p3)
}
 0x118   : > { %s976_s4 = smov 128   ;;  %s977_s5 = smov 8  }
 0x119   : > { %870 = dma.vmem_to_hbm [thread:$0]  (%p1036_p5), %s725_s16, 8192, %s727_s19, %s712_s20, %s976_s4, %s976_s4, %s977_s5  }
 0x11a PF: > { %p876_p4 = scmp.ge.s32.totalorder %s974_s15, 2  ;;  %s741_s6 = sand.u32 1, %s962_s12  }
 0x11b   : > { %s742_s7 = scalar_lea.sflag [#allocation3], %s741_s6 }
 0x11c   : > { %p873_p7 = pnand %p876_p4, %p1040_p6 }
 0x11e   : > { %p874_p8 = pneg %p873_p7 }
 0x120   : > { %957 = dma.done.wait (%p874_p8), %s742_s7, 8192  }
 0x121   : > { %959 = vsyncadd (%p874_p8), %s742_s7, 4294959104  ;;  %p13_p9 = scmp.ge.s32.totalorder %s1023_s18, 4   ;;  %s1361_s12 = smov %s966_s13 }
 0x122   : > { %s1362_s13 = smov %s970_s14  ;;  %s1363_s14 = smov %s1034_s21 }
 0x123   : > { %s1364_s15 = smov %s1023_s18  ;;  %15 = sbr.rel (!%p13_p9) target bundleno = 3 (0x3), region = 67 }
 0x128   :  { %748 = vsyncpa [#allocation3], 1 }
 0x129   :  { %750 = vsyncpa [#allocation3 + $0x1], 1 }

</bundles_post_ra>
